<compile_context>
chip_gen: v7x
topology: tpu7x:2x2x1
jax: 0.10.0
libtpu: 0.0.40
codegen_flags: <defaults>
</compile_context>

<pallas_src>
import functools

import numpy as np

import jax
import jax.numpy as jnp
from jax import lax
from jax.experimental import pallas as pl
from jax.experimental.pallas import tpu as pltpu

# deterministic parameter init (matches nn.Parameter values in __init__)
ROU = 15.0
LAMDA = 0.1
ROUT = 0.1


def admm_kernel(yo_ref, st_ref, mfirst_ref, mlast_ref, out_ref, *, ouc, n):
    """One grid step: full ADMM loop on b_tile row-major-packed images.

    yo_ref:     (b_tile, n*n)  packed observations, packed[b, r*n+k] = yo[b,r,k]
    st_ref:     (n*n, n*n)     S^T with S = Re o ifft2 o (./lhs) o fft2
    mfirst_ref: (1, n*n)       1.0 where the lane is an image's first column
    mlast_ref:  (1, n*n)       1.0 where the lane is an image's last column
    out_ref:    (b_tile, n*n)  x after `ouc` ADMM iterations
    """
    W = n * n
    y = yo_ref[...]
    st = st_ref[...]
    # Boundary-column masks: broadcast + compare once, hoisted out of the loop.
    mask_first = jnp.broadcast_to(mfirst_ref[...], y.shape) > 0.5
    mask_last = jnp.broadcast_to(mlast_ref[...], y.shape) > 0.5

    thr = LAMDA / ROU

    # Periodic differences on the row-major flattened images.  Lane width is
    # exactly one image (n*n), so the row-direction wrap coincides with the
    # lane wrap (single roll); the column wrap needs the mask fix-up.
    def col_fwd(x):                                  # x[r, (k+1)%n] - x[r, k]
        return jnp.where(mask_last,
                         pltpu.roll(x, shift=n - 1, axis=1),
                         pltpu.roll(x, shift=W - 1, axis=1)) - x

    def col_bwd(x):                                  # x[r, (k-1)%n] - x[r, k]
        return jnp.where(mask_first,
                         pltpu.roll(x, shift=W - (n - 1), axis=1),
                         pltpu.roll(x, shift=1, axis=1)) - x

    def row_fwd(x):                                  # x[(r+1)%n, k] - x[r, k]
        return pltpu.roll(x, shift=W - n, axis=1) - x

    def row_bwd(x):                                  # x[(r-1)%n, k] - x[r, k]
        return pltpu.roll(x, shift=n, axis=1) - x

    def dive(a, b):                                  # torch Dive(a, b)
        return col_bwd(a) + row_bwd(b)

    def shrink(u):                                   # soft threshold, 2 VPU ops
        return u - jnp.clip(u, -thr, thr)

    def body(_, carry):
        v1, v2, q1, q2, x = carry                    # q = dual / rou
        rhs = (2.0 * ROUT) * y - ROU * dive(q1 - v1, q2 - v2)
        # x = Re(ifft2(fft2(rhs)/lhs)) for every packed image: one dense
        # (b_tile, W) @ (W, W) matmul with fully dense K and N (K=N=256).
        # TODO(synk): bf16 S^T/rhs with f32 accumulation would give ~3x MXU
        # throughput but needs an accuracy sign-off; kept f32 for semantics.
        x = jnp.dot(rhs, st, preferred_element_type=jnp.float32)
        dx1 = col_fwd(x)
        dx2 = row_fwd(x)
        u1 = dx1 + q1
        u2 = dx2 + q2
        v1 = shrink(u1)
        v2 = shrink(u2)
        q1 = q1 - (v1 - dx1)
        q2 = q2 - (v2 - dx2)
        return (v1, v2, q1, q2, x)

    z = jnp.zeros_like(y)
    # ouc is a small static trip count; full unroll keeps every iteration
    # visible to the LLO scheduler (per-image working set is tiny here).
    carry = lax.fori_loop(0, ouc, body, (z, z, z, z, y), unroll=True)
    out_ref[...] = carry[4]


def _pick_b_tile(batch):
    """Images per grid step.

    The sublane (second-minor) block dim must be a multiple of 8 or the full
    batch; among legal tiles prefer the largest one that still yields >= 2
    grid steps so the "parallel" axis shards across v7x's two TensorCores.
    """
    legal = [c for c in range(1, batch + 1)
             if batch % c == 0 and (c % 8 == 0 or c == batch)]
    multi = [c for c in legal if batch // c >= 2]
    return max(multi) if multi else max(legal)


def _solve_operator_t(n):
    """S^T (n^2, n^2) f32 with S = Re o ifft2 o (./lhs) o fft2 (per image).

    Built with float64 numpy FFTs applied to the basis images (no f32 DFT-angle
    construction, no block-diagonal zeros left for the kernel to multiply).
    """
    d = np.zeros(n, np.float64)
    d[0], d[1] = 1.0, -1.0
    f2 = np.abs(np.fft.fft(d)) ** 2
    lhs = 2.0 * ROUT + ROU * (f2[:, None] + f2[None, :])         # > 0 everywhere
    basis = np.eye(n * n, dtype=np.float64).reshape(n * n, n, n)
    s_t = np.real(np.fft.ifft2(np.fft.fft2(basis, axes=(1, 2)) / lhs[None],
                               axes=(1, 2))).reshape(n * n, n * n)
    return s_t.astype(np.float32)


def admm_forward(yo, ouc=4):
    """JAX/Pallas equivalent of ADMM.forward.  yo: (batch, row, col) float32."""
    yo = jnp.asarray(yo, jnp.float32)
    batch, row, col = yo.shape
    assert row == col, "reference module implicitly assumes row == col"
    n = row
    W = n * n
    b_tile = _pick_b_tile(batch)
    num_tiles = batch // b_tile

    # ---------- host-side constants ----------
    s_t = jnp.asarray(_solve_operator_t(n))                      # (W, W) f32
    k_idx = np.arange(W) % n
    mask_first = jnp.asarray((k_idx == 0).astype(np.float32).reshape(1, W))
    mask_last = jnp.asarray((k_idx == n - 1).astype(np.float32).reshape(1, W))

    # row-major packing: packed[b, r*n + k] = yo[b, r, k]  (a free reshape)
    yo_packed = yo.reshape(batch, W)

    # ---------- VMEM accounting / compiler params ----------
    try:
        phys_vmem = int(pltpu.get_tpu_info().vmem_capacity_bytes)
    except Exception:                        # conservative: v7x per-core VMEM
        phys_vmem = 64 * 1024 * 1024
    vmem_cap = phys_vmem * 3 // 4            # leave pipeline/compiler headroom

    if 2 * W * W * 4 > vmem_cap - (8 << 20):
        # TODO(synk): for large images fall back to structured per-image DFT
        # contractions (O(n^3) flops, O(n^2) constants) instead of the dense
        # (n^2, n^2) solve operator.
        raise NotImplementedError(
            "image too large for the dense solve-operator path")

    words = (2 * W * W                 # S^T (double-buffered by the pipeline)
             + 2 * 2 * b_tile * W      # input + output blocks, double-buffered
             + 2 * 2 * W               # boundary masks, double-buffered
             + 16 * b_tile * W)        # fori carry (5 arrays) + unrolled temps
    vmem_needed = 4 * words

    cp_kwargs = dict(dimension_semantics=("parallel",))
    # v5e's default scoped VMEM is only 16 MiB: raise the limit as soon as the
    # estimate gets near it, but never above physical capacity (64 MiB on v7x).
    if vmem_needed > 12 * 1024 * 1024:
        cp_kwargs["vmem_limit_bytes"] = min(vmem_needed * 5 // 4, vmem_cap)

    flops = int(num_tiles * ouc * 2 * b_tile * W * W)            # solve matmuls
    bytes_accessed = int(4 * (2 * batch * W + num_tiles * (W * W + 2 * W)))
    cost = pl.CostEstimate(flops=flops, transcendentals=0,
                           bytes_accessed=bytes_accessed)

    kernel = functools.partial(admm_kernel, ouc=ouc, n=n)
    out_packed = pl.pallas_call(
        kernel,
        out_shape=jax.ShapeDtypeStruct((batch, W), jnp.float32),
        grid_spec=pltpu.PrefetchScalarGridSpec(
            num_scalar_prefetch=0,
            grid=(num_tiles,),
            in_specs=[
                pl.BlockSpec((b_tile, W), lambda i: (i, 0)),     # packed yo
                pl.BlockSpec((W, W), lambda i: (0, 0)),          # S^T
                pl.BlockSpec((1, W), lambda i: (0, 0)),          # first-col mask
                pl.BlockSpec((1, W), lambda i: (0, 0)),          # last-col mask
            ],
            out_specs=pl.BlockSpec((b_tile, W), lambda i: (i, 0)),
        ),
        compiler_params=pltpu.CompilerParams(**cp_kwargs),
        cost_estimate=cost,
    )(yo_packed, s_t, mask_first, mask_last)

    # unpack: (batch, n*n) -> (batch, n, n)
    return out_packed.reshape(batch, n, n)


def _admm_reference(yo, ouc):
    """float64 numpy transcription of the torch forward() (with q = dual/rou)."""
    yo = np.asarray(yo, np.float64)
    _, n, _ = yo.shape
    d = np.zeros(n, np.float64)
    d[0], d[1] = 1.0, -1.0
    f2 = np.abs(np.fft.fft(d)) ** 2
    lhs = 2.0 * ROUT + ROU * (f2[:, None] + f2[None, :])
    thr = LAMDA / ROU

    def col_fwd(x): return np.roll(x, -1, axis=2) - x
    def row_fwd(x): return np.roll(x, -1, axis=1) - x
    def col_bwd(x): return np.roll(x, 1, axis=2) - x
    def row_bwd(x): return np.roll(x, 1, axis=1) - x

    v1 = np.zeros_like(yo); v2 = np.zeros_like(yo)
    q1 = np.zeros_like(yo); q2 = np.zeros_like(yo)
    x = yo.copy()
    for _ in range(ouc):
        rhs = 2.0 * ROUT * yo - ROU * (col_bwd(q1 - v1) + row_bwd(q2 - v2))
        x = np.real(np.fft.ifft2(np.fft.fft2(rhs, axes=(1, 2)) / lhs[None],
                                 axes=(1, 2)))
        dx1, dx2 = col_fwd(x), row_fwd(x)
        u1, u2 = dx1 + q1, dx2 + q2
        v1 = np.sign(u1) * np.maximum(np.abs(u1) - thr, 0.0)
        v2 = np.sign(u2) * np.maximum(np.abs(u2) - thr, 0.0)
        q1 = q1 - (v1 - dx1)
        q2 = q2 - (v2 - dx2)
    return x


if __name__ == "__main__":
    key = jax.random.PRNGKey(0)
    # batch=16, 16x16 images: b_tile=8 -> two lane-dense (8, 256) "parallel"
    # grid steps (keeps both v7x TensorCores busy), one dense 256x256 solve
    # matmul per ADMM iteration, no block-diagonal zero padding anywhere.
    yo = jax.random.normal(key, (16, 16, 16), dtype=jnp.float32)
    out = admm_forward(yo, ouc=4)       # ouc == `k` from __init__
    jax.block_until_ready(out)
    assert out.shape == yo.shape and out.dtype == jnp.float32

    ref = _admm_reference(np.asarray(yo), ouc=4)
    err = float(np.max(np.abs(np.asarray(out, np.float64) - ref)))
    assert err < 1e-2, f"mismatch vs float64 reference: max abs err = {err:.3e}"
    print("KERNEL_OK")
</pallas_src>

<mosaic_0001>
module attributes {stable_mosaic.version = 11 : i64} {
  func.func @admm_kernel(%arg0: i32, %arg1: memref<8x256xf32, #tpu.memory_space<vmem>>, %arg2: memref<256x256xf32, #tpu.memory_space<vmem>>, %arg3: memref<1x256xf32, #tpu.memory_space<vmem>>, %arg4: memref<1x256xf32, #tpu.memory_space<vmem>>, %arg5: memref<8x256xf32, #tpu.memory_space<vmem>>) attributes {dimension_semantics = [#tpu.dimension_semantics<parallel>], iteration_bounds = array<i64: 2>, scalar_prefetch = 0 : i64, scratch_operands = 0 : i64, tpu.core_type = #tpu.core_type<tc>, window_params = [{transform_indices = @transform_0, window_bounds = array<i64: 8, 256>}, {pipeline_mode = #tpu.pipeline_mode<synchronous>, transform_indices = @transform_1, window_bounds = array<i64: 256, 256>}, {pipeline_mode = #tpu.pipeline_mode<synchronous>, transform_indices = @transform_2, window_bounds = array<i64: 1, 256>}, {pipeline_mode = #tpu.pipeline_mode<synchronous>, transform_indices = @transform_3, window_bounds = array<i64: 1, 256>}, {transform_indices = @transform_4, window_bounds = array<i64: 8, 256>}]} {
    %c0 = arith.constant 0 : index
    %c0_0 = arith.constant 0 : index
    %0 = vector.load %arg1[%c0, %c0_0] : memref<8x256xf32, #tpu.memory_space<vmem>>, vector<8x256xf32>
    %c0_1 = arith.constant 0 : index
    %c0_2 = arith.constant 0 : index
    %1 = vector.load %arg2[%c0_1, %c0_2] : memref<256x256xf32, #tpu.memory_space<vmem>>, vector<256x256xf32>
    %c0_3 = arith.constant 0 : index
    %c0_4 = arith.constant 0 : index
    %2 = vector.load %arg3[%c0_3, %c0_4] : memref<1x256xf32, #tpu.memory_space<vmem>>, vector<1x256xf32>
    %3 = vector.shape_cast %2 : vector<1x256xf32> to vector<1x256xf32>
    %4 = vector.broadcast %3 : vector<1x256xf32> to vector<8x256xf32>
    %cst = arith.constant 5.000000e-01 : f32
    %5 = vector.broadcast %cst : f32 to vector<8x256xf32>
    %6 = arith.cmpf ogt, %4, %5 : vector<8x256xf32>
    %c0_5 = arith.constant 0 : index
    %c0_6 = arith.constant 0 : index
    %7 = vector.load %arg4[%c0_5, %c0_6] : memref<1x256xf32, #tpu.memory_space<vmem>>, vector<1x256xf32>
    %8 = vector.shape_cast %7 : vector<1x256xf32> to vector<1x256xf32>
    %9 = vector.broadcast %8 : vector<1x256xf32> to vector<8x256xf32>
    %cst_7 = arith.constant 5.000000e-01 : f32
    %10 = vector.broadcast %cst_7 : f32 to vector<8x256xf32>
    %11 = arith.cmpf ogt, %9, %10 : vector<8x256xf32>
    %cst_8 = arith.constant 0.000000e+00 : f32
    %12 = vector.broadcast %cst_8 : f32 to vector<8x256xf32>
    %c0_i32 = arith.constant 0 : i32
    %cst_9 = arith.constant 2.000000e-01 : f32
    %13 = vector.broadcast %cst_9 : f32 to vector<8x256xf32>
    %14 = arith.mulf %13, %0 : vector<8x256xf32>
    %15 = arith.subf %12, %12 : vector<8x256xf32>
    %16 = arith.subf %12, %12 : vector<8x256xf32>
    %c241_i32 = arith.constant 241 : i32
    %17 = tpu.dynamic_rotate %15 by %c241_i32 dim 1 : vector<8x256xf32>, i32 -> vector<8x256xf32>
    %c1_i32 = arith.constant 1 : i32
    %18 = tpu.dynamic_rotate %15 by %c1_i32 dim 1 : vector<8x256xf32>, i32 -> vector<8x256xf32>
    %19 = arith.select %6, %17, %18 : vector<8x256xi1>, vector<8x256xf32>
    %20 = arith.subf %19, %15 : vector<8x256xf32>
    %c16_i32 = arith.constant 16 : i32
    %21 = tpu.dynamic_rotate %16 by %c16_i32 dim 1 : vector<8x256xf32>, i32 -> vector<8x256xf32>
    %22 = arith.subf %21, %16 : vector<8x256xf32>
    %23 = arith.addf %20, %22 : vector<8x256xf32>
    %cst_10 = arith.constant 1.500000e+01 : f32
    %24 = vector.broadcast %cst_10 : f32 to vector<8x256xf32>
    %25 = arith.mulf %24, %23 : vector<8x256xf32>
    %26 = arith.subf %14, %25 : vector<8x256xf32>
    %cst_11 = arith.constant dense<0.000000e+00> : vector<8x256xf32>
    %27 = tpu.matmul %26, %1, %cst_11 {dimension_numbers = #tpu.dot_dimension_numbers<[1], [0], [0], [1], [0, 0, 1, 1], [], []>} : vector<8x256xf32>, vector<256x256xf32>, vector<8x256xf32> -> vector<8x256xf32>
    %c15_i32 = arith.constant 15 : i32
    %28 = tpu.dynamic_rotate %27 by %c15_i32 dim 1 : vector<8x256xf32>, i32 -> vector<8x256xf32>
    %c255_i32 = arith.constant 255 : i32
    %29 = tpu.dynamic_rotate %27 by %c255_i32 dim 1 : vector<8x256xf32>, i32 -> vector<8x256xf32>
    %30 = arith.select %11, %28, %29 : vector<8x256xi1>, vector<8x256xf32>
    %31 = arith.subf %30, %27 : vector<8x256xf32>
    %c240_i32 = arith.constant 240 : i32
    %32 = tpu.dynamic_rotate %27 by %c240_i32 dim 1 : vector<8x256xf32>, i32 -> vector<8x256xf32>
    %33 = arith.subf %32, %27 : vector<8x256xf32>
    %34 = arith.addf %31, %12 : vector<8x256xf32>
    %35 = arith.addf %33, %12 : vector<8x256xf32>
    %cst_12 = arith.constant -0.00666666683 : f32
    %cst_13 = arith.constant 0.00666666683 : f32
    %36 = vector.broadcast %cst_12 : f32 to vector<8x256xf32>
    %37 = arith.maximumf %36, %34 : vector<8x256xf32>
    %38 = vector.broadcast %cst_13 : f32 to vector<8x256xf32>
    %39 = arith.minimumf %38, %37 : vector<8x256xf32>
    %40 = arith.subf %34, %39 : vector<8x256xf32>
    %cst_14 = arith.constant -0.00666666683 : f32
    %cst_15 = arith.constant 0.00666666683 : f32
    %41 = vector.broadcast %cst_14 : f32 to vector<8x256xf32>
    %42 = arith.maximumf %41, %35 : vector<8x256xf32>
    %43 = vector.broadcast %cst_15 : f32 to vector<8x256xf32>
    %44 = arith.minimumf %43, %42 : vector<8x256xf32>
    %45 = arith.subf %35, %44 : vector<8x256xf32>
    %46 = arith.subf %40, %31 : vector<8x256xf32>
    %47 = arith.subf %12, %46 : vector<8x256xf32>
    %48 = arith.subf %45, %33 : vector<8x256xf32>
    %49 = arith.subf %12, %48 : vector<8x256xf32>
    %c1_i32_16 = arith.constant 1 : i32
    %cst_17 = arith.constant 2.000000e-01 : f32
    %50 = vector.broadcast %cst_17 : f32 to vector<8x256xf32>
    %51 = arith.mulf %50, %0 : vector<8x256xf32>
    %52 = arith.subf %47, %40 : vector<8x256xf32>
    %53 = arith.subf %49, %45 : vector<8x256xf32>
    %c241_i32_18 = arith.constant 241 : i32
    %54 = tpu.dynamic_rotate %52 by %c241_i32_18 dim 1 : vector<8x256xf32>, i32 -> vector<8x256xf32>
    %c1_i32_19 = arith.constant 1 : i32
    %55 = tpu.dynamic_rotate %52 by %c1_i32_19 dim 1 : vector<8x256xf32>, i32 -> vector<8x256xf32>
    %56 = arith.select %6, %54, %55 : vector<8x256xi1>, vector<8x256xf32>
    %57 = arith.subf %56, %52 : vector<8x256xf32>
    %c16_i32_20 = arith.constant 16 : i32
    %58 = tpu.dynamic_rotate %53 by %c16_i32_20 dim 1 : vector<8x256xf32>, i32 -> vector<8x256xf32>
    %59 = arith.subf %58, %53 : vector<8x256xf32>
    %60 = arith.addf %57, %59 : vector<8x256xf32>
    %cst_21 = arith.constant 1.500000e+01 : f32
    %61 = vector.broadcast %cst_21 : f32 to vector<8x256xf32>
    %62 = arith.mulf %61, %60 : vector<8x256xf32>
    %63 = arith.subf %51, %62 : vector<8x256xf32>
    %cst_22 = arith.constant dense<0.000000e+00> : vector<8x256xf32>
    %64 = tpu.matmul %63, %1, %cst_22 {dimension_numbers = #tpu.dot_dimension_numbers<[1], [0], [0], [1], [0, 0, 1, 1], [], []>} : vector<8x256xf32>, vector<256x256xf32>, vector<8x256xf32> -> vector<8x256xf32>
    %c15_i32_23 = arith.constant 15 : i32
    %65 = tpu.dynamic_rotate %64 by %c15_i32_23 dim 1 : vector<8x256xf32>, i32 -> vector<8x256xf32>
    %c255_i32_24 = arith.constant 255 : i32
    %66 = tpu.dynamic_rotate %64 by %c255_i32_24 dim 1 : vector<8x256xf32>, i32 -> vector<8x256xf32>
    %67 = arith.select %11, %65, %66 : vector<8x256xi1>, vector<8x256xf32>
    %68 = arith.subf %67, %64 : vector<8x256xf32>
    %c240_i32_25 = arith.constant 240 : i32
    %69 = tpu.dynamic_rotate %64 by %c240_i32_25 dim 1 : vector<8x256xf32>, i32 -> vector<8x256xf32>
    %70 = arith.subf %69, %64 : vector<8x256xf32>
    %71 = arith.addf %68, %47 : vector<8x256xf32>
    %72 = arith.addf %70, %49 : vector<8x256xf32>
    %cst_26 = arith.constant -0.00666666683 : f32
    %cst_27 = arith.constant 0.00666666683 : f32
    %73 = vector.broadcast %cst_26 : f32 to vector<8x256xf32>
    %74 = arith.maximumf %73, %71 : vector<8x256xf32>
    %75 = vector.broadcast %cst_27 : f32 to vector<8x256xf32>
    %76 = arith.minimumf %75, %74 : vector<8x256xf32>
    %77 = arith.subf %71, %76 : vector<8x256xf32>
    %cst_28 = arith.constant -0.00666666683 : f32
    %cst_29 = arith.constant 0.00666666683 : f32
    %78 = vector.broadcast %cst_28 : f32 to vector<8x256xf32>
    %79 = arith.maximumf %78, %72 : vector<8x256xf32>
    %80 = vector.broadcast %cst_29 : f32 to vector<8x256xf32>
    %81 = arith.minimumf %80, %79 : vector<8x256xf32>
    %82 = arith.subf %72, %81 : vector<8x256xf32>
    %83 = arith.subf %77, %68 : vector<8x256xf32>
    %84 = arith.subf %47, %83 : vector<8x256xf32>
    %85 = arith.subf %82, %70 : vector<8x256xf32>
    %86 = arith.subf %49, %85 : vector<8x256xf32>
    %c2_i32 = arith.constant 2 : i32
    %cst_30 = arith.constant 2.000000e-01 : f32
    %87 = vector.broadcast %cst_30 : f32 to vector<8x256xf32>
    %88 = arith.mulf %87, %0 : vector<8x256xf32>
    %89 = arith.subf %84, %77 : vector<8x256xf32>
    %90 = arith.subf %86, %82 : vector<8x256xf32>
    %c241_i32_31 = arith.constant 241 : i32
    %91 = tpu.dynamic_rotate %89 by %c241_i32_31 dim 1 : vector<8x256xf32>, i32 -> vector<8x256xf32>
    %c1_i32_32 = arith.constant 1 : i32
    %92 = tpu.dynamic_rotate %89 by %c1_i32_32 dim 1 : vector<8x256xf32>, i32 -> vector<8x256xf32>
    %93 = arith.select %6, %91, %92 : vector<8x256xi1>, vector<8x256xf32>
    %94 = arith.subf %93, %89 : vector<8x256xf32>
    %c16_i32_33 = arith.constant 16 : i32
    %95 = tpu.dynamic_rotate %90 by %c16_i32_33 dim 1 : vector<8x256xf32>, i32 -> vector<8x256xf32>
    %96 = arith.subf %95, %90 : vector<8x256xf32>
    %97 = arith.addf %94, %96 : vector<8x256xf32>
    %cst_34 = arith.constant 1.500000e+01 : f32
    %98 = vector.broadcast %cst_34 : f32 to vector<8x256xf32>
    %99 = arith.mulf %98, %97 : vector<8x256xf32>
    %100 = arith.subf %88, %99 : vector<8x256xf32>
    %cst_35 = arith.constant dense<0.000000e+00> : vector<8x256xf32>
    %101 = tpu.matmul %100, %1, %cst_35 {dimension_numbers = #tpu.dot_dimension_numbers<[1], [0], [0], [1], [0, 0, 1, 1], [], []>} : vector<8x256xf32>, vector<256x256xf32>, vector<8x256xf32> -> vector<8x256xf32>
    %c15_i32_36 = arith.constant 15 : i32
    %102 = tpu.dynamic_rotate %101 by %c15_i32_36 dim 1 : vector<8x256xf32>, i32 -> vector<8x256xf32>
    %c255_i32_37 = arith.constant 255 : i32
    %103 = tpu.dynamic_rotate %101 by %c255_i32_37 dim 1 : vector<8x256xf32>, i32 -> vector<8x256xf32>
    %104 = arith.select %11, %102, %103 : vector<8x256xi1>, vector<8x256xf32>
    %105 = arith.subf %104, %101 : vector<8x256xf32>
    %c240_i32_38 = arith.constant 240 : i32
    %106 = tpu.dynamic_rotate %101 by %c240_i32_38 dim 1 : vector<8x256xf32>, i32 -> vector<8x256xf32>
    %107 = arith.subf %106, %101 : vector<8x256xf32>
    %108 = arith.addf %105, %84 : vector<8x256xf32>
    %109 = arith.addf %107, %86 : vector<8x256xf32>
    %cst_39 = arith.constant -0.00666666683 : f32
    %cst_40 = arith.constant 0.00666666683 : f32
    %110 = vector.broadcast %cst_39 : f32 to vector<8x256xf32>
    %111 = arith.maximumf %110, %108 : vector<8x256xf32>
    %112 = vector.broadcast %cst_40 : f32 to vector<8x256xf32>
    %113 = arith.minimumf %112, %111 : vector<8x256xf32>
    %114 = arith.subf %108, %113 : vector<8x256xf32>
    %cst_41 = arith.constant -0.00666666683 : f32
    %cst_42 = arith.constant 0.00666666683 : f32
    %115 = vector.broadcast %cst_41 : f32 to vector<8x256xf32>
    %116 = arith.maximumf %115, %109 : vector<8x256xf32>
    %117 = vector.broadcast %cst_42 : f32 to vector<8x256xf32>
    %118 = arith.minimumf %117, %116 : vector<8x256xf32>
    %119 = arith.subf %109, %118 : vector<8x256xf32>
    %120 = arith.subf %114, %105 : vector<8x256xf32>
    %121 = arith.subf %84, %120 : vector<8x256xf32>
    %122 = arith.subf %119, %107 : vector<8x256xf32>
    %123 = arith.subf %86, %122 : vector<8x256xf32>
    %c3_i32 = arith.constant 3 : i32
    %cst_43 = arith.constant 2.000000e-01 : f32
    %124 = vector.broadcast %cst_43 : f32 to vector<8x256xf32>
    %125 = arith.mulf %124, %0 : vector<8x256xf32>
    %126 = arith.subf %121, %114 : vector<8x256xf32>
    %127 = arith.subf %123, %119 : vector<8x256xf32>
    %c241_i32_44 = arith.constant 241 : i32
    %128 = tpu.dynamic_rotate %126 by %c241_i32_44 dim 1 : vector<8x256xf32>, i32 -> vector<8x256xf32>
    %c1_i32_45 = arith.constant 1 : i32
    %129 = tpu.dynamic_rotate %126 by %c1_i32_45 dim 1 : vector<8x256xf32>, i32 -> vector<8x256xf32>
    %130 = arith.select %6, %128, %129 : vector<8x256xi1>, vector<8x256xf32>
    %131 = arith.subf %130, %126 : vector<8x256xf32>
    %c16_i32_46 = arith.constant 16 : i32
    %132 = tpu.dynamic_rotate %127 by %c16_i32_46 dim 1 : vector<8x256xf32>, i32 -> vector<8x256xf32>
    %133 = arith.subf %132, %127 : vector<8x256xf32>
    %134 = arith.addf %131, %133 : vector<8x256xf32>
    %cst_47 = arith.constant 1.500000e+01 : f32
    %135 = vector.broadcast %cst_47 : f32 to vector<8x256xf32>
    %136 = arith.mulf %135, %134 : vector<8x256xf32>
    %137 = arith.subf %125, %136 : vector<8x256xf32>
    %cst_48 = arith.constant dense<0.000000e+00> : vector<8x256xf32>
    %138 = tpu.matmul %137, %1, %cst_48 {dimension_numbers = #tpu.dot_dimension_numbers<[1], [0], [0], [1], [0, 0, 1, 1], [], []>} : vector<8x256xf32>, vector<256x256xf32>, vector<8x256xf32> -> vector<8x256xf32>
    %c15_i32_49 = arith.constant 15 : i32
    %139 = tpu.dynamic_rotate %138 by %c15_i32_49 dim 1 : vector<8x256xf32>, i32 -> vector<8x256xf32>
    %c255_i32_50 = arith.constant 255 : i32
    %140 = tpu.dynamic_rotate %138 by %c255_i32_50 dim 1 : vector<8x256xf32>, i32 -> vector<8x256xf32>
    %141 = arith.select %11, %139, %140 : vector<8x256xi1>, vector<8x256xf32>
    %142 = arith.subf %141, %138 : vector<8x256xf32>
    %c240_i32_51 = arith.constant 240 : i32
    %143 = tpu.dynamic_rotate %138 by %c240_i32_51 dim 1 : vector<8x256xf32>, i32 -> vector<8x256xf32>
    %144 = arith.subf %143, %138 : vector<8x256xf32>
    %145 = arith.addf %142, %121 : vector<8x256xf32>
    %146 = arith.addf %144, %123 : vector<8x256xf32>
    %cst_52 = arith.constant -0.00666666683 : f32
    %cst_53 = arith.constant 0.00666666683 : f32
    %147 = vector.broadcast %cst_52 : f32 to vector<8x256xf32>
    %148 = arith.maximumf %147, %145 : vector<8x256xf32>
    %149 = vector.broadcast %cst_53 : f32 to vector<8x256xf32>
    %150 = arith.minimumf %149, %148 : vector<8x256xf32>
    %151 = arith.subf %145, %150 : vector<8x256xf32>
    %cst_54 = arith.constant -0.00666666683 : f32
    %cst_55 = arith.constant 0.00666666683 : f32
    %152 = vector.broadcast %cst_54 : f32 to vector<8x256xf32>
    %153 = arith.maximumf %152, %146 : vector<8x256xf32>
    %154 = vector.broadcast %cst_55 : f32 to vector<8x256xf32>
    %155 = arith.minimumf %154, %153 : vector<8x256xf32>
    %156 = arith.subf %146, %155 : vector<8x256xf32>
    %157 = arith.subf %151, %142 : vector<8x256xf32>
    %158 = arith.subf %121, %157 : vector<8x256xf32>
    %159 = arith.subf %156, %144 : vector<8x256xf32>
    %160 = arith.subf %123, %159 : vector<8x256xf32>
    %c0_56 = arith.constant 0 : index
    %c0_57 = arith.constant 0 : index
    %161 = vector.load %arg5[%c0_56, %c0_57] : memref<8x256xf32, #tpu.memory_space<vmem>>, vector<8x256xf32>
    tpu.vector_store %arg5[%c0_56, %c0_57], %138 {strides = array<i32>} : memref<8x256xf32, #tpu.memory_space<vmem>>, vector<8x256xf32>,
    return
  }
  func.func @transform_0(%arg0: i32) -> (i32, i32) {
    %c0_i32 = arith.constant 0 : i32
    %c0_i32_0 = arith.constant 0 : i32
    return %arg0, %c0_i32 : i32, i32
  }
  func.func @transform_1(%arg0: i32) -> (i32, i32) {
    %c0_i32 = arith.constant 0 : i32
    %c0_i32_0 = arith.constant 0 : i32
    %c0_i32_1 = arith.constant 0 : i32
    return %c0_i32, %c0_i32_0 : i32, i32
  }
  func.func @transform_2(%arg0: i32) -> (i32, i32) {
    %c0_i32 = arith.constant 0 : i32
    %c0_i32_0 = arith.constant 0 : i32
    %c0_i32_1 = arith.constant 0 : i32
    return %c0_i32, %c0_i32_0 : i32, i32
  }
  func.func @transform_3(%arg0: i32) -> (i32, i32) {
    %c0_i32 = arith.constant 0 : i32
    %c0_i32_0 = arith.constant 0 : i32
    %c0_i32_1 = arith.constant 0 : i32
    return %c0_i32, %c0_i32_0 : i32, i32
  }
  func.func @transform_4(%arg0: i32) -> (i32, i32) {
    %c0_i32 = arith.constant 0 : i32
    %c0_i32_0 = arith.constant 0 : i32
    return %arg0, %c0_i32 : i32, i32
  }
}

</mosaic_0001>

<bundles_post_ra>
// kernel: tpu_custom_call.1
= control target key start
LH: loop header
LB: loop body
LE: loop exit
PB: predicated region body
PF: predicated region fallthrough
CT: control target
= control target key end

     0   :  { %9 = vsyncpa [#allocation3], 0  ;;  %s2120_s0 = inlined_call_operand.hbm [shape: f32[16,256], index: 0, kind: input, shape index: {}]   ;;  %s2121_s1 = inlined_call_operand.hbm [shape: f32[256,256], index: 1, kind: input, shape index: {}]   ;;  %s2122_s2 = inlined_call_operand.vmem [shape: f32[1,256], index: 2, kind: input, shape index: {}]   ;;  %s2123_s3 = inlined_call_operand.vmem [shape: f32[1,256], index: 3, kind: input, shape index: {}]   ;;  %s2124_s4 = inlined_call_operand.hbm [shape: f32[16,256], index: 4, kind: output, shape index: {}]  }
   0x1   :  { %11 = vsyncpa [#allocation3 + $0x1], 0 }
   0x2   :  { %12 = vsyncpa [#allocation6], 0 }
   0x3   :  { %13 = vsyncpa [#allocation4], 0 }
   0x4   :  { %15 = vsyncpa [#allocation4 + $0x1], 0  ;;  %s1493_s15 = smov 0   ;;  %s1495_s16 = smov 0  }
   0x5   :  { %s1497_s17 = smov 0   ;;  %s1499_s18 = smov 0  }
   0x6 LB: > { %s1514_s19 = sadd.s32 4294967295, %s1454_s18   ;;  %s974_s20 = sadd.s32 4294967294, %s1454_s18   ;;  %s1454_s18 = sphi %s1499_s18, %s2144_s18   ;;  %s1450_s17 = sphi %s1497_s17, %s2143_s17   ;;  %s1446_s16 = sphi %s1495_s16, %s2142_s16   ;;  %s1442_s15 = sphi %s1493_s15, %s2141_s15  }
   0x7   : > { %p41_p0 = scmp.ne.s32.totalorder %s1446_s16, %s1442_s15  ;;  %p2125_p1 = scmp.eq.s32.totalorder %s1514_s19, 0 }
   0x8   : > { %p134_p3 = scmp.eq.s32.totalorder %s974_s20, 1  ;;  %p975_p5 = scmp.ge.s32.totalorder %s1454_s18, 1 }
   0x9   : > { %p1523_p4 = por %p2125_p1, %p41_p0  ;;  %p141_p7 = scmp.lt.s32.totalorder %s1454_s18, 3 }
   0xa   : > { %p1528_p6 = por %p134_p3, %p41_p0  ;;  %s1456_s24 = smov [#allocation5]  }
   0xb   : > { %s2128_s21 = scalar_select %p1523_p4, 1, 0 }
   0xc   : > { %s2129_s22 = scalar_select %p1528_p6, 1, 0 }
   0xd   : > { %p1533_p8 = pnand %p975_p5, %p141_p7  ;;  %s153_s25 = sshll.u32 %s1456_s24, 4  ;;  %s1537_s25 = int_to_ptr.vmem [resolvable:$true] %s153_s25 }
   0xe   : > { %s1549_s27 = sadd.s32 1, %s1454_s18   ;;  %s28_s28 = sadd.s32 1, %s1450_s17 }
   0xf   : > { %s2130_s23 = scalar_select %p1533_p8, 1, 0 }
  0x10   : > { %p1268_p9 = pneg %p1533_p8  ;;  %s25_s29 = ssub.s32 %s1454_s18, %s1549_s27 }
  0x11   : > { %s1326_s6 = scalar_lea.hbm %s2121_s1, 8192 }
  0x12   : > { %p1544_p11 = pnand %p1268_p9, %p2125_p1  ;;  %p1327_p12 = scmp.ne.s32.totalorder %s2121_s1, %s1326_s6 }
  0x13   : > { %p1333_p5 = scmp.lt.u32.totalorder %s1326_s6, %s2121_s1 }
  0x14   : > { %p1328_p13 = pneg %p1544_p11 }
  0x16   : > { %p1329_p0 = pnand %p1328_p13, %p1327_p12 }
  0x18   : > { %p1330_p3 = pneg %p1329_p0 }
  0x1a   : > { %p1335_p7 = pnand %p1333_p5, %p1330_p3 }
  0x1c   : > { %1338 = shalt.err (!%p1335_p7)
}
  0x1d   : > { %s1339_s11 = scalar_lea.vmem %s1537_s25, 8192  ;;  %p1347_p2 = scmp.lt.s32.totalorder %s1537_s25, %s1537_s25 }
  0x1e   : > { %p1340_p9 = scmp.ne.s32.totalorder %s1537_s25, %s1339_s11  ;;  %p1348_p6 = scmp.lt.s32.totalorder %s1339_s11, %s1339_s11 }
  0x20   : > { %p1342_p10 = pnand %p1340_p9, %p1328_p13  ;;  %p1349_p4 = por %p1348_p6, %p1347_p2 }
  0x22   : > { %p1343_p1 = pneg %p1342_p10 }
  0x24   : > { %p1350_p8 = pnand %p1349_p4, %p1343_p1 }
  0x26   : > { %1353 = shalt.err (!%p1350_p8)
}
  0x27   : > { %s1457_s12 = smov 256   ;;  %s1458_s13 = smov 16  }
  0x28   : > { %1271 = dma.hbm_to_vmem [thread:$0]  (!%p1544_p11), %s2121_s1, 8192, %s1537_s25, [#allocation6], %s1457_s12, %s1457_s12, %s1458_s13  }
  0x29   : > { %p26_p2 = scmp.eq.s32.totalorder %s25_s29, 0  ;;  %p35_p1 = scmp.ne.s32.totalorder %s1450_s17, %s1446_s16 }
  0x2a   : > { %p36_p4 = scmp.eq.s32.totalorder %s1454_s18, 0  ;;  %p1281_p6 = scmp.lt.s32.totalorder %s1454_s18, 2 }
  0x2b   : > { %s1580_s24 = scalar_select %p26_p2, %s1450_s17, %s28_s28  }
  0x2c   : > { %p37_p8 = por %p36_p4, %p35_p1  ;;  %p2132_p10 = scmp.eq.s32.totalorder %s1514_s19, 1 }
  0x2d   : > { %s173_s5 = sand.u32 1, %s1450_s17   ;;  %s1002_s6 = sshll.u32 %s1454_s18, 8 }
  0x2e   : > { %p1584_p12 = por %p2132_p10, %p35_p1  ;;  %s978_s7 = sshll.u32 %s173_s5, 4 }
  0x2f   : > { %s1593_s9 = scalar_lea.hbm %s2120_s0, %s1002_s6  ;;  %s177_s25 = scalar_lea.vmem [#allocation2], %s978_s7 }
  0x30   : > { %s185_s28 = sshll.u32 %s177_s25, 4  ;;  %p1595_p11 = pnand %p1281_p6, %p37_p8  ;;  %s1599_s28 = int_to_ptr.vmem [resolvable:$true] %s185_s28 }
  0x31   : > { %s174_s10 = scalar_lea.sflag [#allocation3], %s173_s5  ;;  %s1354_s11 = scalar_lea.hbm %s1593_s9, 256 }
  0x32   : > { %p1355_p13 = scmp.ne.s32.totalorder %s1593_s9, %s1354_s11  ;;  %p1356_p0 = pneg %p1595_p11 }
  0x33   : > { %s1359_s14 = scalar_lea.hbm %s2120_s0, 512  ;;  %p1360_p7 = scmp.lt.u32.totalorder %s1593_s9, %s2120_s0 }
  0x34   : > { %p1357_p3 = pnand %p1356_p0, %p1355_p13  ;;  %p1361_p9 = scmp.lt.u32.totalorder %s1359_s14, %s1354_s11 }
  0x35   : > { %p1363_p1 = scmp.lt.u32.totalorder %s1354_s11, %s1593_s9 }
  0x36   : > { %p1358_p5 = pneg %p1357_p3  ;;  %p1362_p2 = por %p1361_p9, %p1360_p7 }
  0x38   : > { %p1364_p4 = por %p1363_p1, %p1362_p2 }
  0x3a   : > { %p1365_p6 = pnand %p1364_p4, %p1358_p5 }
  0x3c   : > { %1368 = shalt.err (!%p1365_p6)
}
  0x3d   : > { %s1369_s5 = scalar_lea.vmem %s1599_s28, 256  ;;  %s1459_s7 = smov [#allocation2]  }
  0x3e   : > { %p1370_p8 = scmp.ne.s32.totalorder %s1599_s28, %s1369_s5  ;;  %s1374_s26 = sshll.u32 %s1459_s7, 4  ;;  %s1375_s26 = int_to_ptr.vmem [resolvable:$false] %s1374_s26 }
  0x3f   : > { %s1376_s8 = scalar_lea.vmem %s1375_s26, 512  ;;  %p1377_p3 = scmp.lt.s32.totalorder %s1599_s28, %s1375_s26 }
  0x40   : > { %p1372_p10 = pnand %p1370_p8, %p1356_p0  ;;  %p1378_p7 = scmp.lt.s32.totalorder %s1376_s8, %s1369_s5 }
  0x42   : > { %p1373_p13 = pneg %p1372_p10  ;;  %p1379_p9 = por %p1378_p7, %p1377_p3 }
  0x44   : > { %p1380_p2 = pnand %p1379_p9, %p1373_p13 }
  0x46   : > { %1383 = shalt.err (!%p1380_p2)
}
  0x47   : > { %1275 = dma.hbm_to_vmem [thread:$0]  (!%p1595_p11), %s1593_s9, 256, %s1599_s28, %s174_s10  }
  0x48   : > { %p2135_p5 = scmp.ne.s32.totalorder %s2130_s23, 0 }
  0x49   : > { %s1629_s25 = sand.u32 (!%p2135_p5), 1, %s1446_s16   ;;  %p2136_p0 = scmp.ne.s32.totalorder (!%p2135_p5), %s2128_s21, 0 }
  0x4a   : > { %194 = sbr.rel (%p2135_p5) target bundleno = 1881 (0x759), region = 36  ;;  %s982_s11 = sshll.u32 (!%p2135_p5), %s1629_s25, 4 }
  0x4b   : > { %s197_s12 = scalar_lea.sflag (!%p2135_p5), [#allocation3], %s1629_s25  ;;  %s1635_s13 = scalar_lea.vmem (!%p2135_p5), [#allocation2], %s982_s11 }
  0x51   : > { %1429 = dma.done.wait (%p2136_p0), %s197_s12, 256  }
  0x52   : > { %1431 = vsyncadd (%p2136_p0), %s197_s12, 4294967040  ;;  %p2137_p11 = scmp.eq.s32.totalorder %s1514_s19, 0 }
  0x54   : > { %1433 = dma.done.wait (%p2137_p11), [#allocation6], 8192   ;;  %p2138_p1 = pmov %p2137_p11 }
  0x55   : > { %v1460_v0 = vmov 0.0   ;;  %s1461_s23 = smov 113   ;;  %s1462_s9 = smov 16   ;;  %v232_v1 = vld [vmem:[#allocation5 + $0x8] sm:$0xff]  ;;  %v234_v2 = vld [vmem:[#allocation5 + $0x18] sm:$0xff]  ;;  %v231_v3 = vld [vmem:[#allocation5] sm:$0xff] }
  0x56   : > { %1435 = vsyncadd (%p2138_p1), [#allocation6], 4294959104  ;;  %325 = vrot.lane.b32.xlu0 %v1460_v0, %s1461_s23  ;;  %335 = vrot.lane.b32.xlu1 %v1460_v0, %s1462_s9  ;;  %s1463_s28 = smov 1   ;;  %v1648_v4 = vpack.c.bf16 %v234_v2, %v232_v1  ;;  %v233_v5 = vld [vmem:[#allocation5 + $0x10] sm:$0xff]  ;;  %v236_v6 = vld [vmem:[#allocation5 + $0x28] sm:$0xff]  ;;  %s1464_s10 = smov 15  }
  0x57   : > { %v238_v7 = vld [vmem:[#allocation5 + $0x38] sm:$0xff]  ;;  %v1650_v8 = vpack.c.bf16 %v233_v5, %v231_v3  ;;  %v235_v10 = vld [vmem:[#allocation5 + $0x20] sm:$0xff]  ;;  %v237_v11 = vld [vmem:[#allocation5 + $0x30] sm:$0xff]  ;;  %s1465_s14 = smov 127   ;;  %s1466_s20 = smov 112  }
  0x58   : > { %v1652_v9 = vpack.c.bf16 %v238_v7, %v236_v6  ;;  %v240_v12 = vld [vmem:[#allocation5 + $0x48] sm:$0xff]  ;;  %1005 = vmatprep.subr.bf16.mxu0 %v1648_v4  ;;  %v242_v13 = vld [vmem:[#allocation5 + $0x58] sm:$0xff]  ;;  %1069 = vmatprep.subr.bf16.mxu1 %v1648_v4  ;;  %v1657_v14 = vpack.c.bf16 %v237_v11, %v235_v10  ;;  %v239_v16 = vld [vmem:[#allocation5 + $0x40] sm:$0xff]  ;;  %s228_s7 = scalar_lea.vmem [#allocation7], %s982_s11  ;;  %s1003_s8 = sshll.u32 %s1514_s19, 8 }
  0x59   : > { %1007 = vmatpush1.bf16.msra.mxu0 %v1650_v8  ;;  %1071 = vmatpush1.bf16.msra.mxu1 %v1650_v8  ;;  %v1661_v15 = vpack.c.bf16 %v242_v13, %v240_v12  ;;  %v241_v17 = vld [vmem:[#allocation5 + $0x50] sm:$0xff]  ;;  %v244_v18 = vld [vmem:[#allocation5 + $0x68] sm:$0xff]  ;;  %v246_v19 = vld [vmem:[#allocation5 + $0x78] sm:$0xff]  ;;  %s894_s26 = sshll.u32 %s228_s7, 4  ;;  %s1467_s19 = smov [#allocation7]   ;;  %s2073_s26 = int_to_ptr.vmem [resolvable:$true] %s894_s26 }
  0x5a   : > { %330 = vrot.lane.b32.xlu0 %v1460_v0, %s1463_s28  ;;  %1009 = vmatprep.subr.bf16.mxu0 %v1652_v9  ;;  %v1665_v20 = vpack.c.bf16 %v241_v17, %v239_v16  ;;  %v1669_v21 = vpack.c.bf16 %v246_v19, %v244_v18  ;;  %v243_v22 = vld [vmem:[#allocation5 + $0x60] sm:$0xff]  ;;  %v245_v23 = vld [vmem:[#allocation5 + $0x70] sm:$0xff]  ;;  %v248_v24 = vld [vmem:[#allocation5 + $0x88] sm:$0xff]  ;;  %s1388_s11 = sshll.u32 %s1467_s19, 4  ;;  %s1389_s11 = int_to_ptr.vmem [resolvable:$false] %s1388_s11 }
  0x5b   : > { %1073 = vmatprep.subr.bf16.mxu1 %v1652_v9  ;;  %v250_v25 = vld [vmem:[#allocation5 + $0x98] sm:$0xff]  ;;  %v1673_v26 = vpack.c.bf16 %v245_v23, %v243_v22  ;;  %v247_v28 = vld [vmem:[#allocation5 + $0x80] sm:$0xff]  ;;  %v249_v29 = vld [vmem:[#allocation5 + $0x90] sm:$0xff]  ;;  %s1390_s21 = scalar_lea.vmem %s1389_s11, 512  ;;  %p1391_p10 = scmp.lt.s32.totalorder %s2073_s26, %s1389_s11 }
  0x5c   : > { %v1677_v27 = vpack.c.bf16 %v250_v25, %v248_v24  ;;  %v252_v30 = vld [vmem:[#allocation5 + $0xa8] sm:$0xff]  ;;  %v254_v31 = vld [vmem:[#allocation5 + $0xb8] sm:$0xff]  ;;  %v1681_v32 = vpack.c.bf16 %v249_v29, %v247_v28  ;;  %v251_v34 = vld [vmem:[#allocation5 + $0xa0] sm:$0xff] }
  0x5d   : > { %1011 = vmatpush1.bf16.msra.mxu0 %v1657_v14  ;;  %1075 = vmatpush1.bf16.msra.mxu1 %v1657_v14  ;;  %v1685_v33 = vpack.c.bf16 %v254_v31, %v252_v30  ;;  %v253_v35 = vld [vmem:[#allocation5 + $0xb0] sm:$0xff]  ;;  %v256_v36 = vld [vmem:[#allocation5 + $0xc8] sm:$0xff]  ;;  %v258_v37 = vld [vmem:[#allocation5 + $0xd8] sm:$0xff] }
  0x5e   : > { %1013 = vmatprep.subr.bf16.mxu0 %v1661_v15  ;;  %1077 = vmatprep.subr.bf16.mxu1 %v1661_v15  ;;  %v1689_v38 = vpack.c.bf16 %v253_v35, %v251_v34  ;;  %v1693_v39 = vpack.c.bf16 %v258_v37, %v256_v36  ;;  %v255_v40 = vld [vmem:[#allocation5 + $0xc0] sm:$0xff]  ;;  %v257_v41 = vld [vmem:[#allocation5 + $0xd0] sm:$0xff]  ;;  %v260_v42 = vld [vmem:[#allocation5 + $0xe8] sm:$0xff] }
  0x5f   : > { %v262_v43 = vld [vmem:[#allocation5 + $0xf8] sm:$0xff]  ;;  %v1697_v44 = vpack.c.bf16 %v257_v41, %v255_v40  ;;  %v259_v46 = vld [vmem:[#allocation5 + $0xe0] sm:$0xff]  ;;  %v261_v47 = vld [vmem:[#allocation5 + $0xf0] sm:$0xff] }
  0x60   : > { %v1701_v45 = vpack.c.bf16 %v262_v43, %v260_v42  ;;  %v264_v48 = vld [vmem:[#allocation5 + $0x108] sm:$0xff]  ;;  %v266_v49 = vld [vmem:[#allocation5 + $0x118] sm:$0xff]  ;;  %v1705_v50 = vpack.c.bf16 %v261_v47, %v259_v46  ;;  %v263_v52 = vld [vmem:[#allocation5 + $0x100] sm:$0xff] }
  0x61   : > { %1015 = vmatpush1.bf16.msra.mxu0 %v1665_v20  ;;  %1079 = vmatpush1.bf16.msra.mxu1 %v1665_v20  ;;  %v1709_v51 = vpack.c.bf16 %v266_v49, %v264_v48  ;;  %v265_v53 = vld [vmem:[#allocation5 + $0x110] sm:$0xff]  ;;  %v268_v54 = vld [vmem:[#allocation5 + $0x128] sm:$0xff]  ;;  %v270_v55 = vld [vmem:[#allocation5 + $0x138] sm:$0xff]  ;;  %v297_v48 = vlaneseq }
  0x62   : > { %1017 = vmatprep.subr.bf16.mxu0 %v1669_v21  ;;  %1081 = vmatprep.subr.bf16.mxu1 %v1669_v21  ;;  %v1713_v56 = vpack.c.bf16 %v265_v53, %v263_v52  ;;  %v1717_v57 = vpack.c.bf16 %v270_v55, %v268_v54  ;;  %v267_v58 = vld [vmem:[#allocation5 + $0x120] sm:$0xff]  ;;  %v269_v59 = vld [vmem:[#allocation5 + $0x130] sm:$0xff]  ;;  %v272_v60 = vld [vmem:[#allocation5 + $0x148] sm:$0xff] }
  0x63   : > { %v274_v61 = vld [vmem:[#allocation5 + $0x158] sm:$0xff]  ;;  %v1721_v62 = vpack.c.bf16 %v269_v59, %v267_v58  ;;  %v271_v0 = vld [vmem:[#allocation5 + $0x140] sm:$0xff]  ;;  %v273_v1 = vld [vmem:[#allocation5 + $0x150] sm:$0xff]  ;;  %v1779_v49 = vshrl.u32 %v297_v48, 7 }
  0x64   : > { %v1725_v63 = vpack.c.bf16 %v274_v61, %v272_v60  ;;  %v276_v2 = vld [vmem:[#allocation5 + $0x168] sm:$0xff]  ;;  %v278_v3 = vld [vmem:[#allocation5 + $0x178] sm:$0xff]  ;;  %v1729_v5 = vpack.c.bf16 %v273_v1, %v271_v0  ;;  %v275_v7 = vld [vmem:[#allocation5 + $0x160] sm:$0xff] }
  0x65   : > { %1019 = vmatpush1.bf16.msra.mxu0 %v1673_v26  ;;  %1083 = vmatpush1.bf16.msra.mxu1 %v1673_v26  ;;  %v1733_v6 = vpack.c.bf16 %v278_v3, %v276_v2  ;;  %v277_v10 = vld [vmem:[#allocation5 + $0x170] sm:$0xff]  ;;  %v280_v11 = vld [vmem:[#allocation5 + $0x188] sm:$0xff]  ;;  %v282_v12 = vld [vmem:[#allocation5 + $0x198] sm:$0xff]  ;;  %v299_v52 = vsub.s32 0, %v1779_v49  ;;  %v303_v53 = vsub.s32 1, %v1779_v49 }
  0x66   : > { %1021 = vmatprep.subr.bf16.mxu0 %v1677_v27  ;;  %1085 = vmatprep.subr.bf16.mxu1 %v1677_v27  ;;  %v1737_v13 = vpack.c.bf16 %v277_v10, %v275_v7  ;;  %v1741_v16 = vpack.c.bf16 %v282_v12, %v280_v11  ;;  %v279_v17 = vld [vmem:[#allocation5 + $0x180] sm:$0xff]  ;;  %v281_v18 = vld [vmem:[#allocation5 + $0x190] sm:$0xff]  ;;  %v284_v19 = vld [vmem:[#allocation5 + $0x1a8] sm:$0xff] }
  0x67   : > { %v286_v22 = vld [vmem:[#allocation5 + $0x1b8] sm:$0xff]  ;;  %v1745_v23 = vpack.c.bf16 %v281_v18, %v279_v17  ;;  %v283_v25 = vld [vmem:[#allocation5 + $0x1a0] sm:$0xff]  ;;  %v285_v28 = vld [vmem:[#allocation5 + $0x1b0] sm:$0xff] }
  0x68   : > { %v1749_v24 = vpack.c.bf16 %v286_v22, %v284_v19  ;;  %v288_v29 = vld [vmem:[#allocation5 + $0x1c8] sm:$0xff]  ;;  %v290_v30 = vld [vmem:[#allocation5 + $0x1d8] sm:$0xff]  ;;  %v1753_v31 = vpack.c.bf16 %v285_v28, %v283_v25  ;;  %v287_v35 = vld [vmem:[#allocation5 + $0x1c0] sm:$0xff] }
  0x69   : > { %1023 = vmatpush1.bf16.msra.mxu0 %v1681_v32  ;;  %1087 = vmatpush1.bf16.msra.mxu1 %v1681_v32  ;;  %v1757_v34 = vpack.c.bf16 %v290_v30, %v288_v29  ;;  %v289_v36 = vld [vmem:[#allocation5 + $0x1d0] sm:$0xff]  ;;  %v292_v37 = vld [vmem:[#allocation5 + $0x1e8] sm:$0xff]  ;;  %v294_v40 = vld [vmem:[#allocation5 + $0x1f8] sm:$0xff]  ;;  %v1849_v29 = vand.u32 127, %v297_v48 }
  0x6a   : > { %1025 = vmatprep.subr.bf16.mxu0 %v1685_v33  ;;  %1089 = vmatprep.subr.bf16.mxu1 %v1685_v33  ;;  %v1761_v41 = vpack.c.bf16 %v289_v36, %v287_v35  ;;  %v1765_v42 = vpack.c.bf16 %v294_v40, %v292_v37  ;;  %v291_v43 = vld [vmem:[#allocation5 + $0x1e0] sm:$0xff]  ;;  %v293_v46 = vld [vmem:[#allocation5 + $0x1f0] sm:$0xff]  ;;  %v230_v60 = vld [vmem:[%s1635_s13 + $0x8] sm:$0xff] }
  0x6b   : > { %v1769_v47 = vpack.c.bf16 %v293_v46, %v291_v43  ;;  %v295_v54 = vld [vmem:[%s2122_s2] sm:$0x3]  ;;  %v1802_v10 = vmul.f32 0.2, %v230_v60  ;;  %vm419_vm2 = vcmp.lt.s32.totalorder %v1849_v29, 15  ;;  %vm426_vm3 = vcmp.lt.s32.totalorder %v1849_v29, 127 }
  0x6c   : > { %v1788_v55 = vrot.slane %v295_v54, %v299_v52  ;;  %v1792_v58 = vrot.slane %v295_v54, %v303_v53  ;;  %v229_v61 = vld [vmem:[%s1635_s13] sm:$0xff]  ;;  %vm437_vm6 = vcmp.lt.s32.totalorder %v1849_v29, 112  ;;  %vm332_vm7 = vcmp.lt.s32.totalorder %v1849_v29, 1 }
  0x6d   : > { %1027 = vmatpush1.bf16.msra.mxu0 %v1689_v38  ;;  %1091 = vmatpush1.bf16.msra.mxu1 %v1689_v38  ;;  %v1804_v11 = vmul.f32 0.2, %v229_v61  ;;  %v309_v28 = vld [vmem:[%s2123_s3] sm:$0x3]  ;;  %vm329_vm8 = vcmp.lt.s32.totalorder %v1849_v29, 113  ;;  %vm337_vm9 = vcmp.lt.s32.totalorder %v1849_v29, 16 }
  0x6e   : > { %1029 = vmatprep.subr.bf16.mxu0 %v1693_v39  ;;  %1093 = vmatprep.subr.bf16.mxu1 %v1693_v39  ;;  %vm307_vm0 = vcmp.gt.f32.partialorder %v1788_v55, 0.5  ;;  %vm308_vm1 = vcmp.gt.f32.partialorder %v1792_v58, 0.5  ;;  %v1853_v35 = vrot.slane %v309_v28, %v299_v52  ;;  %v1857_v36 = vrot.slane %v309_v28, %v303_v53 }
  0x70   : > { %vm321_vm4 = vcmp.gt.f32.partialorder %v1853_v35, 0.5  ;;  %vm322_vm5 = vcmp.gt.f32.partialorder %v1857_v36, 0.5 }
  0x71   : > { %1031 = vmatpush1.bf16.msra.mxu0 %v1697_v44  ;;  %1095 = vmatpush1.bf16.msra.mxu1 %v1697_v44 }
  0x72   : > { %1033 = vmatprep.subr.bf16.mxu0 %v1701_v45  ;;  %1097 = vmatprep.subr.bf16.mxu1 %v1701_v45 }
  0x75   : > { %1035 = vmatpush1.bf16.msra.mxu0 %v1705_v50  ;;  %1099 = vmatpush1.bf16.msra.mxu1 %v1705_v50 }
  0x76   : > { %1037 = vmatprep.subr.bf16.mxu0 %v1709_v51  ;;  %1101 = vmatprep.subr.bf16.mxu1 %v1709_v51 }
  0x79   : > { %1039 = vmatpush1.bf16.msra.mxu0 %v1713_v56  ;;  %1103 = vmatpush1.bf16.msra.mxu1 %v1713_v56 }
  0x7a   : > { %1041 = vmatprep.subr.bf16.mxu0 %v1717_v57  ;;  %1105 = vmatprep.subr.bf16.mxu1 %v1717_v57 }
  0x7d   : > { %1043 = vmatpush1.bf16.msra.mxu0 %v1721_v62  ;;  %1107 = vmatpush1.bf16.msra.mxu1 %v1721_v62 }
  0x7e   : > { %1045 = vmatprep.subr.bf16.mxu0 %v1725_v63  ;;  %1109 = vmatprep.subr.bf16.mxu1 %v1725_v63 }
  0x81   : > { %1047 = vmatpush1.bf16.msra.mxu0 %v1729_v5  ;;  %1111 = vmatpush1.bf16.msra.mxu1 %v1729_v5 }
  0x82   : > { %1049 = vmatprep.subr.bf16.mxu0 %v1733_v6  ;;  %1113 = vmatprep.subr.bf16.mxu1 %v1733_v6 }
  0x85   : > { %1051 = vmatpush1.bf16.msra.mxu0 %v1737_v13  ;;  %1115 = vmatpush1.bf16.msra.mxu1 %v1737_v13 }
  0x86   : > { %1053 = vmatprep.subr.bf16.mxu0 %v1741_v16  ;;  %1117 = vmatprep.subr.bf16.mxu1 %v1741_v16 }
  0x89   : > { %1055 = vmatpush1.bf16.msra.mxu0 %v1745_v23  ;;  %1119 = vmatpush1.bf16.msra.mxu1 %v1745_v23 }
  0x8a   : > { %1057 = vmatprep.subr.bf16.mxu0 %v1749_v24  ;;  %1121 = vmatprep.subr.bf16.mxu1 %v1749_v24 }
  0x8d   : > { %1059 = vmatpush1.bf16.msra.mxu0 %v1753_v31  ;;  %1123 = vmatpush1.bf16.msra.mxu1 %v1753_v31 }
  0x8e   : > { %1061 = vmatprep.subr.bf16.mxu0 %v1757_v34  ;;  %1125 = vmatprep.subr.bf16.mxu1 %v1757_v34 }
  0x91   : > { %1063 = vmatpush1.bf16.msra.mxu0 %v1761_v41  ;;  %1127 = vmatpush1.bf16.msra.mxu1 %v1761_v41 }
  0x92   : > { %1065 = vmatprep.subr.bf16.mxu0 %v1765_v42  ;;  %1129 = vmatprep.subr.bf16.mxu1 %v1765_v42 }
  0x95   : > { %1067 = vmatpush1.bf16.msra.mxu0 %v1769_v47  ;;  %1131 = vmatpush1.bf16.msra.mxu1 %v1769_v47 }
  0x96   : > { %1133 = vmatprep.subr.bf16.mxu0 %v1648_v4  ;;  %1197 = vmatprep.subr.bf16.mxu1 %v1648_v4 }
  0xc8   : > { %v326_v4 = vpop.permute.xlu0 %325  ;;  %v336_v59 = vpop.permute.xlu1 %335 }
  0xcc   : > { %v331_v0 = vpop.permute.xlu0 %330 }
  0xcd   : > { %v333_v1 = vsel %vm307_vm0, %v326_v4, %v331_v0  ;;  %v334_v2 = vsel %vm308_vm1, %v326_v4, %v331_v0 }
  0xce   : > { %v338_v3 = vadd.f32 %v336_v59, %v333_v1  ;;  %v339_v7 = vadd.f32 %v336_v59, %v334_v2 }
  0xd0   : > { %v340_v12 = vmul.f32 15.0, %v338_v3  ;;  %v341_v17 = vmul.f32 15.0, %v339_v7 }
  0xd2   : > { %v343_v18 = vsub.f32 %v1802_v10, %v341_v17  ;;  %v342_v19 = vsub.f32 %v1804_v11, %v340_v12 }
  0xd4   : > { %408 = vmatprep.mubr.f32.mxu0 %v343_v18 }
  0xd5   : > { %409 = vmatmul.mubr.f32.vlgmr.msra.gmra.mrb[0].mxu0 %v342_v19 }
  0xd6   : > { %1135 = vmatpush1.bf16.msra.mxu0 %v1650_v8 }
  0xd7   : > { %1137 = vmatprep.subr.bf16.mxu0 %v1652_v9 }
  0xda   : > { %1139 = vmatpush1.bf16.msra.mxu0 %v1657_v14 }
  0xdb   : > { %1141 = vmatprep.subr.bf16.mxu0 %v1661_v15 }
  0xde   : > { %1143 = vmatpush1.bf16.msra.mxu0 %v1665_v20 }
  0xdf   : > { %1145 = vmatprep.subr.bf16.mxu0 %v1669_v21 }
  0xe2   : > { %1147 = vmatpush1.bf16.msra.mxu0 %v1673_v26 }
  0xe3   : > { %1149 = vmatprep.subr.bf16.mxu0 %v1677_v27 }
  0xe6   : > { %1151 = vmatpush1.bf16.msra.mxu0 %v1681_v32 }
  0xe7   : > { %1153 = vmatprep.subr.bf16.mxu0 %v1685_v33 }
  0xea   : > { %1155 = vmatpush1.bf16.msra.mxu0 %v1689_v38 }
  0xeb   : > { %1157 = vmatprep.subr.bf16.mxu0 %v1693_v39 }
  0xee   : > { %1159 = vmatpush1.bf16.msra.mxu0 %v1697_v44 }
  0xef   : > { %1161 = vmatprep.subr.bf16.mxu0 %v1701_v45 }
  0xf2   : > { %1163 = vmatpush1.bf16.msra.mxu0 %v1705_v50 }
  0xf3   : > { %1165 = vmatprep.subr.bf16.mxu0 %v1709_v51 }
  0xf6   : > { %1167 = vmatpush1.bf16.msra.mxu0 %v1713_v56 }
  0xf7   : > { %1169 = vmatprep.subr.bf16.mxu0 %v1717_v57 }
  0xfa   : > { %1171 = vmatpush1.bf16.msra.mxu0 %v1721_v62 }
  0xfb   : > { %1173 = vmatprep.subr.bf16.mxu0 %v1725_v63 }
  0xfe   : > { %1175 = vmatpush1.bf16.msra.mxu0 %v1729_v5 }
  0xff   : > { %1177 = vmatprep.subr.bf16.mxu0 %v1733_v6 }
 0x102   : > { %1179 = vmatpush1.bf16.msra.mxu0 %v1737_v13 }
 0x103   : > { %1181 = vmatprep.subr.bf16.mxu0 %v1741_v16 }
 0x106   : > { %1183 = vmatpush1.bf16.msra.mxu0 %v1745_v23 }
 0x107   : > { %1185 = vmatprep.subr.bf16.mxu0 %v1749_v24 }
 0x10a   : > { %1187 = vmatpush1.bf16.msra.mxu0 %v1753_v31 }
 0x10b   : > { %1189 = vmatprep.subr.bf16.mxu0 %v1757_v34 }
 0x10e   : > { %1191 = vmatpush1.bf16.msra.mxu0 %v1761_v41 }
 0x10f   : > { %1193 = vmatprep.subr.bf16.mxu0 %v1765_v42 }
 0x112   : > { %1195 = vmatpush1.bf16.msra.mxu0 %v1769_v47 }
 0x1a8   : > { %v410_v22 = vpop.f32.mrb[0].mxu0 }
 0x1a9   : > { %415 = vrot.lane.b32.xlu1 %v410_v22, %s1464_s10  ;;  %v412_v25 = vpop.f32.mrb[1].mxu0 }
 0x1aa   : > { %417 = vrot.lane.b32.xlu0 %v412_v25, %s1464_s10 }
 0x1ad   : > { %422 = vrot.lane.b32.xlu1 %v410_v22, %s1465_s14 }
 0x1ae   : > { %424 = vrot.lane.b32.xlu0 %v412_v25, %s1465_s14 }
 0x1b1   : > { %433 = vrot.lane.b32.xlu1 %v410_v22, %s1466_s20 }
 0x1b2   : > { %435 = vrot.lane.b32.xlu0 %v412_v25, %s1466_s20 }
 0x21b   : > { %v416_v30 = vpop.permute.xlu1 %415 }
 0x21c   : > { %v418_v37 = vpop.permute.xlu0 %417 }
 0x21d   : > { %v420_v46 = vsel %vm419_vm2, %v416_v30, %v418_v37  ;;  %v421_v48 = vsel %vm419_vm2, %v418_v37, %v416_v30 }
 0x21f   : > { %v423_v40 = vpop.permute.xlu1 %422 }
 0x220   : > { %v425_v43 = vpop.permute.xlu0 %424 }
 0x221   : > { %v427_v49 = vsel %vm426_vm3, %v423_v40, %v425_v43  ;;  %v428_v52 = vsel %vm426_vm3, %v425_v43, %v423_v40 }
 0x222   : > { %v429_v53 = vsel %vm321_vm4, %v421_v48, %v427_v49  ;;  %v430_v54 = vsel %vm322_vm5, %v420_v46, %v428_v52 }
 0x223   : > { %v431_v4 = vsub.f32 %v429_v53, %v410_v22  ;;  %v432_v59 = vsub.f32 %v430_v54, %v412_v25  ;;  %v434_v60 = vpop.permute.xlu1 %433 }
 0x224   : > { %v436_v61 = vpop.permute.xlu0 %435 }
 0x225   : > { %v438_v0 = vsel %vm437_vm6, %v434_v60, %v436_v61  ;;  %v439_v1 = vsel %vm437_vm6, %v436_v61, %v434_v60  ;;  %v986_v2 = vclamps-f32 %v432_v59, 0.006666667  ;;  %v985_v3 = vclamps-f32 %v431_v4, 0.006666667 }
 0x226   : > { %v440_v7 = vsub.f32 %v438_v0, %v410_v22  ;;  %v441_v12 = vsub.f32 %v439_v1, %v412_v25 }
 0x227   : > { %v451_v17 = vsub.f32 %v432_v59, %v986_v2  ;;  %v450_v18 = vsub.f32 %v431_v4, %v985_v3 }
 0x228   : > { %v987_v19 = vclamps-f32 %v440_v7, 0.006666667  ;;  %v988_v28 = vclamps-f32 %v441_v12, 0.006666667 }
 0x229   : > { %v459_v30 = vsub.f32 %v451_v17, %v432_v59  ;;  %v458_v37 = vsub.f32 %v450_v18, %v431_v4 }
 0x22a   : > { %v457_v40 = vsub.f32 %v441_v12, %v988_v28  ;;  %v456_v43 = vsub.f32 %v440_v7, %v987_v19 }
 0x22b   : > { %v1880_v46 = vsub.f32 0.0, %v459_v30  ;;  %v1882_v48 = vsub.f32 0.0, %v458_v37 }
 0x22c   : > { %v463_v53 = vsub.f32 %v457_v40, %v441_v12  ;;  %v462_v54 = vsub.f32 %v456_v43, %v440_v7 }
 0x22d   : > { %v467_v49 = vsub.f32 %v1880_v46, %v451_v17  ;;  %v466_v52 = vsub.f32 %v1882_v48, %v450_v18 }
 0x22e   : > { %v1888_v22 = vsub.f32 0.0, %v463_v53  ;;  %v1890_v25 = vsub.f32 0.0, %v462_v54 }
 0x22f   : > { %472 = vrot.lane.b32.xlu0 %v467_v49, %s1461_s23  ;;  %470 = vrot.lane.b32.xlu1 %v466_v52, %s1461_s23 }
 0x230   : > { %v469_v4 = vsub.f32 %v1888_v22, %v457_v40  ;;  %v468_v59 = vsub.f32 %v1890_v25, %v456_v43 }
 0x233   : > { %478 = vrot.lane.b32.xlu0 %v467_v49, %s1463_s28  ;;  %476 = vrot.lane.b32.xlu1 %v466_v52, %s1463_s28 }
 0x237   : > { %488 = vrot.lane.b32.xlu0 %v469_v4, %s1462_s9  ;;  %486 = vrot.lane.b32.xlu1 %v468_v59, %s1462_s9 }
 0x2a1   : > { %v471_v60 = vpop.permute.xlu1 %470  ;;  %v473_v61 = vpop.permute.xlu0 %472 }
 0x2a2   : > { %v474_v7 = vsel %vm329_vm8, %v471_v60, %v473_v61  ;;  %v475_v12 = vsel %vm329_vm8, %v473_v61, %v471_v60 }
 0x2a5   : > { %v477_v0 = vpop.permute.xlu1 %476  ;;  %v479_v1 = vpop.permute.xlu0 %478 }
 0x2a6   : > { %v480_v2 = vsel %vm332_vm7, %v477_v0, %v479_v1  ;;  %v481_v3 = vsel %vm332_vm7, %v479_v1, %v477_v0 }
 0x2a7   : > { %v482_v17 = vsel %vm307_vm0, %v474_v7, %v481_v3  ;;  %v483_v18 = vsel %vm308_vm1, %v475_v12, %v480_v2 }
 0x2a8   : > { %v484_v40 = vsub.f32 %v482_v17, %v466_v52  ;;  %v485_v54 = vsub.f32 %v483_v18, %v467_v49 }
 0x2a9   : > { %v487_v19 = vpop.permute.xlu1 %486  ;;  %v489_v28 = vpop.permute.xlu0 %488 }
 0x2aa   : > { %v490_v30 = vsel %vm337_vm9, %v487_v19, %v489_v28  ;;  %v491_v37 = vsel %vm337_vm9, %v489_v28, %v487_v19 }
 0x2ab   : > { %v492_v43 = vsub.f32 %v491_v37, %v468_v59  ;;  %v493_v53 = vsub.f32 %v490_v30, %v469_v4 }
 0x2ad   : > { %v494_v60 = vadd.f32 %v492_v43, %v484_v40  ;;  %v495_v61 = vadd.f32 %v493_v53, %v485_v54 }
 0x2af   : > { %v496_v0 = vmul.f32 15.0, %v494_v60  ;;  %v497_v1 = vmul.f32 15.0, %v495_v61 }
 0x2b1   : > { %v499_v3 = vsub.f32 %v1802_v10, %v497_v1  ;;  %v498_v2 = vsub.f32 %v1804_v11, %v496_v0 }
 0x2b3   : > { %564 = vmatprep.mubr.f32.mxu1 %v499_v3 }
 0x2b4   : > { %565 = vmatmul.mubr.f32.vlgmr.msra.gmra.mrb[0].mxu1 %v498_v2 }
 0x2b5   : > { %1199 = vmatpush1.bf16.msra.mxu1 %v1650_v8 }
 0x2b6   : > { %1201 = vmatprep.subr.bf16.mxu1 %v1652_v9 }
 0x2b9   : > { %1203 = vmatpush1.bf16.msra.mxu1 %v1657_v14 }
 0x2ba   : > { %1205 = vmatprep.subr.bf16.mxu1 %v1661_v15 }
 0x2bd   : > { %1207 = vmatpush1.bf16.msra.mxu1 %v1665_v20 }
 0x2be   : > { %1209 = vmatprep.subr.bf16.mxu1 %v1669_v21 }
 0x2c1   : > { %1211 = vmatpush1.bf16.msra.mxu1 %v1673_v26 }
 0x2c2   : > { %1213 = vmatprep.subr.bf16.mxu1 %v1677_v27 }
 0x2c5   : > { %1215 = vmatpush1.bf16.msra.mxu1 %v1681_v32 }
 0x2c6   : > { %1217 = vmatprep.subr.bf16.mxu1 %v1685_v33 }
 0x2c9   : > { %1219 = vmatpush1.bf16.msra.mxu1 %v1689_v38 }
 0x2ca   : > { %1221 = vmatprep.subr.bf16.mxu1 %v1693_v39 }
 0x2cd   : > { %1223 = vmatpush1.bf16.msra.mxu1 %v1697_v44 }
 0x2ce   : > { %1225 = vmatprep.subr.bf16.mxu1 %v1701_v45 }
 0x2d1   : > { %1227 = vmatpush1.bf16.msra.mxu1 %v1705_v50 }
 0x2d2   : > { %1229 = vmatprep.subr.bf16.mxu1 %v1709_v51 }
 0x2d5   : > { %1231 = vmatpush1.bf16.msra.mxu1 %v1713_v56 }
 0x2d6   : > { %1233 = vmatprep.subr.bf16.mxu1 %v1717_v57 }
 0x2d9   : > { %1235 = vmatpush1.bf16.msra.mxu1 %v1721_v62 }
 0x2da   : > { %1237 = vmatprep.subr.bf16.mxu1 %v1725_v63 }
 0x2dd   : > { %1239 = vmatpush1.bf16.msra.mxu1 %v1729_v5 }
 0x2de   : > { %1241 = vmatprep.subr.bf16.mxu1 %v1733_v6 }
 0x2e1   : > { %1243 = vmatpush1.bf16.msra.mxu1 %v1737_v13 }
 0x2e2   : > { %1245 = vmatprep.subr.bf16.mxu1 %v1741_v16 }
 0x2e5   : > { %1247 = vmatpush1.bf16.msra.mxu1 %v1745_v23 }
 0x2e6   : > { %1249 = vmatprep.subr.bf16.mxu1 %v1749_v24 }
 0x2e9   : > { %1251 = vmatpush1.bf16.msra.mxu1 %v1753_v31 }
 0x2ea   : > { %1253 = vmatprep.subr.bf16.mxu1 %v1757_v34 }
 0x2ed   : > { %1255 = vmatpush1.bf16.msra.mxu1 %v1761_v41 }
 0x2ee   : > { %1257 = vmatprep.subr.bf16.mxu1 %v1765_v42 }
 0x2f1   : > { %1259 = vmatpush1.bf16.msra.mxu1 %v1769_v47 }
 0x387   : > { %v566_v8 = vpop.f32.mrb[0].mxu1 }
 0x388   : > { %571 = vrot.lane.b32.xlu1 %v566_v8, %s1464_s10  ;;  %v568_v9 = vpop.f32.mrb[1].mxu1 }
 0x389   : > { %573 = vrot.lane.b32.xlu0 %v568_v9, %s1464_s10 }
 0x38c   : > { %577 = vrot.lane.b32.xlu1 %v566_v8, %s1465_s14 }
 0x38d   : > { %579 = vrot.lane.b32.xlu0 %v568_v9, %s1465_s14 }
 0x390   : > { %587 = vrot.lane.b32.xlu1 %v566_v8, %s1466_s20 }
 0x391   : > { %589 = vrot.lane.b32.xlu0 %v568_v9, %s1466_s20 }
 0x3fa   : > { %v572_v14 = vpop.permute.xlu1 %571 }
 0x3fb   : > { %v574_v15 = vpop.permute.xlu0 %573 }
 0x3fc   : > { %v575_v26 = vsel %vm419_vm2, %v572_v14, %v574_v15  ;;  %v576_v27 = vsel %vm419_vm2, %v574_v15, %v572_v14 }
 0x3fe   : > { %v578_v20 = vpop.permute.xlu1 %577 }
 0x3ff   : > { %v580_v21 = vpop.permute.xlu0 %579 }
 0x400   : > { %v581_v32 = vsel %vm426_vm3, %v578_v20, %v580_v21  ;;  %v582_v33 = vsel %vm426_vm3, %v580_v21, %v578_v20 }
 0x401   : > { %v583_v38 = vsel %vm321_vm4, %v576_v27, %v581_v32  ;;  %v584_v39 = vsel %vm322_vm5, %v575_v26, %v582_v33 }
 0x402   : > { %v585_v44 = vsub.f32 %v583_v38, %v566_v8  ;;  %v586_v45 = vsub.f32 %v584_v39, %v568_v9  ;;  %v588_v50 = vpop.permute.xlu1 %587 }
 0x403   : > { %v590_v51 = vpop.permute.xlu0 %589 }
 0x404   : > { %v595_v56 = vadd.f32 %v585_v44, %v1882_v48  ;;  %v596_v57 = vadd.f32 %v586_v45, %v1880_v46  ;;  %v591_v62 = vsel %vm437_vm6, %v588_v50, %v590_v51  ;;  %v592_v63 = vsel %vm437_vm6, %v590_v51, %v588_v50 }
 0x405   : > { %v593_v5 = vsub.f32 %v591_v62, %v566_v8  ;;  %v594_v6 = vsub.f32 %v592_v63, %v568_v9 }
 0x406   : > { %v990_v13 = vclamps-f32 %v596_v57, 0.006666667  ;;  %v989_v16 = vclamps-f32 %v595_v56, 0.006666667 }
 0x407   : > { %v597_v23 = vadd.f32 %v593_v5, %v1890_v25  ;;  %v598_v24 = vadd.f32 %v594_v6, %v1888_v22 }
 0x408   : > { %v604_v31 = vsub.f32 %v596_v57, %v990_v13  ;;  %v603_v34 = vsub.f32 %v595_v56, %v989_v16 }
 0x409   : > { %v991_v41 = vclamps-f32 %v597_v23, 0.006666667  ;;  %v992_v42 = vclamps-f32 %v598_v24, 0.006666667 }
 0x40a   : > { %v612_v47 = vsub.f32 %v604_v31, %v586_v45  ;;  %v611_v49 = vsub.f32 %v603_v34, %v585_v44 }
 0x40b   : > { %v609_v52 = vsub.f32 %v597_v23, %v991_v41  ;;  %v610_v4 = vsub.f32 %v598_v24, %v992_v42 }
 0x40c   : > { %v1977_v59 = vsub.f32 %v1880_v46, %v612_v47  ;;  %v1980_v7 = vsub.f32 %v1882_v48, %v611_v49 }
 0x40d   : > { %v615_v12 = vsub.f32 %v609_v52, %v593_v5  ;;  %v616_v17 = vsub.f32 %v610_v4, %v594_v6 }
 0x40e   : > { %v620_v18 = vsub.f32 %v1977_v59, %v604_v31  ;;  %v619_v19 = vsub.f32 %v1980_v7, %v603_v34 }
 0x40f   : > { %v1987_v28 = vsub.f32 %v1890_v25, %v615_v12  ;;  %v1990_v30 = vsub.f32 %v1888_v22, %v616_v17 }
 0x410   : > { %625 = vrot.lane.b32.xlu0 %v620_v18, %s1461_s23  ;;  %623 = vrot.lane.b32.xlu1 %v619_v19, %s1461_s23 }
 0x411   : > { %v622_v46 = vsub.f32 %v1990_v30, %v610_v4  ;;  %v621_v48 = vsub.f32 %v1987_v28, %v609_v52 }
 0x414   : > { %631 = vrot.lane.b32.xlu0 %v620_v18, %s1463_s28  ;;  %629 = vrot.lane.b32.xlu1 %v619_v19, %s1463_s28 }
 0x418   : > { %641 = vrot.lane.b32.xlu0 %v622_v46, %s1462_s9  ;;  %639 = vrot.lane.b32.xlu1 %v621_v48, %s1462_s9 }
 0x482   : > { %v624_v37 = vpop.permute.xlu1 %623  ;;  %v626_v40 = vpop.permute.xlu0 %625 }
 0x483   : > { %v627_v54 = vsel %vm329_vm8, %v624_v37, %v626_v40  ;;  %v628_v60 = vsel %vm329_vm8, %v626_v40, %v624_v37 }
 0x486   : > { %v630_v43 = vpop.permute.xlu1 %629  ;;  %v632_v25 = vpop.permute.xlu0 %631 }
 0x487   : > { %v633_v22 = vsel %vm332_vm7, %v630_v43, %v632_v25  ;;  %v634_v53 = vsel %vm332_vm7, %v632_v25, %v630_v43 }
 0x488   : > { %v635_v61 = vsel %vm307_vm0, %v627_v54, %v634_v53  ;;  %v636_v0 = vsel %vm308_vm1, %v628_v60, %v633_v22 }
 0x489   : > { %v637_v9 = vsub.f32 %v635_v61, %v619_v19  ;;  %v638_v14 = vsub.f32 %v636_v0, %v620_v18 }
 0x48a   : > { %v640_v1 = vpop.permute.xlu1 %639  ;;  %v642_v3 = vpop.permute.xlu0 %641 }
 0x48b   : > { %v643_v2 = vsel %vm337_vm9, %v640_v1, %v642_v3  ;;  %v644_v8 = vsel %vm337_vm9, %v642_v3, %v640_v1 }
 0x48c   : > { %v645_v15 = vsub.f32 %v644_v8, %v621_v48  ;;  %v646_v20 = vsub.f32 %v643_v2, %v622_v46 }
 0x48e   : > { %v647_v21 = vadd.f32 %v645_v15, %v637_v9  ;;  %v648_v26 = vadd.f32 %v646_v20, %v638_v14 }
 0x490   : > { %v649_v27 = vmul.f32 15.0, %v647_v21  ;;  %v650_v32 = vmul.f32 15.0, %v648_v26 }
 0x492   : > { %v651_v33 = vsub.f32 %v1804_v11, %v649_v27  ;;  %v652_v38 = vsub.f32 %v1802_v10, %v650_v32 }
 0x494   : > { %717 = vmatprep.mubr.f32.mxu0 %v652_v38 }
 0x495   : > { %718 = vmatmul.mubr.f32.vlgmr.msra.gmra.mrb[2].mxu0 %v651_v33 }
 0x568   : > { %v719_v39 = vpop.f32.mrb[2].mxu0 }
 0x569   : > { %724 = vrot.lane.b32.xlu1 %v719_v39, %s1464_s10  ;;  %v721_v44 = vpop.f32.mrb[3].mxu0 }
 0x56a   : > { %726 = vrot.lane.b32.xlu0 %v721_v44, %s1464_s10 }
 0x56d   : > { %730 = vrot.lane.b32.xlu1 %v719_v39, %s1465_s14 }
 0x56e   : > { %732 = vrot.lane.b32.xlu0 %v721_v44, %s1465_s14 }
 0x571   : > { %740 = vrot.lane.b32.xlu1 %v719_v39, %s1466_s20 }
 0x572   : > { %742 = vrot.lane.b32.xlu0 %v721_v44, %s1466_s20 }
 0x5db   : > { %v725_v45 = vpop.permute.xlu1 %724 }
 0x5dc   : > { %v727_v50 = vpop.permute.xlu0 %726 }
 0x5dd   : > { %v728_v57 = vsel %vm419_vm2, %v725_v45, %v727_v50  ;;  %v729_v62 = vsel %vm419_vm2, %v727_v50, %v725_v45 }
 0x5df   : > { %v731_v51 = vpop.permute.xlu1 %730 }
 0x5e0   : > { %v733_v56 = vpop.permute.xlu0 %732 }
 0x5e1   : > { %v734_v63 = vsel %vm426_vm3, %v731_v51, %v733_v56  ;;  %v735_v5 = vsel %vm426_vm3, %v733_v56, %v731_v51 }
 0x5e2   : > { %v736_v6 = vsel %vm321_vm4, %v729_v62, %v734_v63  ;;  %v737_v13 = vsel %vm322_vm5, %v728_v57, %v735_v5 }
 0x5e3   : > { %v738_v16 = vsub.f32 %v736_v6, %v719_v39  ;;  %v739_v23 = vsub.f32 %v737_v13, %v721_v44  ;;  %v741_v24 = vpop.permute.xlu1 %740 }
 0x5e4   : > { %v743_v31 = vpop.permute.xlu0 %742 }
 0x5e5   : > { %v748_v34 = vadd.f32 %v738_v16, %v1980_v7  ;;  %v749_v41 = vadd.f32 %v739_v23, %v1977_v59  ;;  %v744_v42 = vsel %vm437_vm6, %v741_v24, %v743_v31  ;;  %v745_v47 = vsel %vm437_vm6, %v743_v31, %v741_v24 }
 0x5e6   : > { %v746_v49 = vsub.f32 %v744_v42, %v719_v39  ;;  %v747_v35 = vsub.f32 %v745_v47, %v721_v44 }
 0x5e7   : > { %v994_v52 = vclamps-f32 %v749_v41, 0.006666667  ;;  %v993_v4 = vclamps-f32 %v748_v34, 0.006666667 }
 0x5e8   : > { %v750_v36 = vadd.f32 %v746_v49, %v1987_v28  ;;  %v751_v12 = vadd.f32 %v747_v35, %v1990_v30 }
 0x5e9   : > { %v757_v17 = vsub.f32 %v749_v41, %v994_v52  ;;  %v756_v18 = vsub.f32 %v748_v34, %v993_v4 }
 0x5ea   : > { %v995_v19 = vclamps-f32 %v750_v36, 0.006666667  ;;  %v996_v46 = vclamps-f32 %v751_v12, 0.006666667 }
 0x5eb   : > { %v765_v48 = vsub.f32 %v757_v17, %v739_v23  ;;  %v764_v37 = vsub.f32 %v756_v18, %v738_v16 }
 0x5ec   : > { %v762_v40 = vsub.f32 %v750_v36, %v995_v19  ;;  %v763_v43 = vsub.f32 %v751_v12, %v996_v46 }
 0x5ed   : > { %v767_v25 = vsub.f32 %v1977_v59, %v765_v48  ;;  %v766_v22 = vsub.f32 %v1980_v7, %v764_v37 }
 0x5ee   : > { %v768_v53 = vsub.f32 %v762_v40, %v746_v49  ;;  %v769_v54 = vsub.f32 %v763_v43, %v747_v35 }
 0x5ef   : > { %v773_v60 = vsub.f32 %v767_v25, %v757_v17  ;;  %v772_v61 = vsub.f32 %v766_v22, %v756_v18 }
 0x5f0   : > { %v771_v0 = vsub.f32 %v1990_v30, %v769_v54  ;;  %v770_v1 = vsub.f32 %v1987_v28, %v768_v53 }
 0x5f1   : > { %778 = vrot.lane.b32.xlu0 %v773_v60, %s1461_s23  ;;  %776 = vrot.lane.b32.xlu1 %v772_v61, %s1461_s23  ;;  %s2078_s23 = scalar_lea.hbm %s2124_s4, %s1003_s8 }
 0x5f2   : > { %v775_v3 = vsub.f32 %v771_v0, %v763_v43  ;;  %v774_v59 = vsub.f32 %v770_v1, %v762_v40 }
 0x5f5   : > { %784 = vrot.lane.b32.xlu0 %v773_v60, %s1463_s28  ;;  %782 = vrot.lane.b32.xlu1 %v772_v61, %s1463_s28  ;;  %s1384_s28 = scalar_lea.vmem %s2073_s26, 256 }
 0x5f6   : > { %p1385_p4 = scmp.ne.s32.totalorder %s2073_s26, %s1384_s28  ;;  %p1392_p13 = scmp.lt.s32.totalorder %s1390_s21, %s1384_s28 }
 0x5f8   : > { %p1386_p6 = pnand %p1385_p4, %p1584_p12  ;;  %p1393_p3 = por %p1392_p13, %p1391_p10 }
 0x5f9   : > { %794 = vrot.lane.b32.xlu0 %v775_v3, %s1462_s9  ;;  %792 = vrot.lane.b32.xlu1 %v774_v59, %s1462_s9  ;;  %s880_s9 = scalar_lea.sflag [#allocation4], %s1629_s25 }
 0x5fa   : > { %p1387_p8 = pneg %p1386_p6 }
 0x5fc   : > { %p1394_p7 = pnand %p1393_p3, %p1387_p8 }
 0x663   : > { %v777_v7 = vpop.permute.xlu1 %776  ;;  %v779_v2 = vpop.permute.xlu0 %778 }
 0x664   : > { %v780_v30 = vsel %vm329_vm8, %v777_v7, %v779_v2  ;;  %v781_v15 = vsel %vm329_vm8, %v779_v2, %v777_v7 }
 0x667   : > { %v783_v8 = vpop.permute.xlu1 %782  ;;  %v785_v9 = vpop.permute.xlu0 %784 }
 0x668   : > { %v786_v14 = vsel %vm332_vm7, %v783_v8, %v785_v9  ;;  %v787_v28 = vsel %vm332_vm7, %v785_v9, %v783_v8 }
 0x669   : > { %v788_v20 = vsel %vm307_vm0, %v780_v30, %v787_v28  ;;  %v789_v21 = vsel %vm308_vm1, %v781_v15, %v786_v14 }
 0x66a   : > { %v790_v38 = vsub.f32 %v788_v20, %v772_v61  ;;  %v791_v39 = vsub.f32 %v789_v21, %v773_v60 }
 0x66b   : > { %v793_v26 = vpop.permute.xlu1 %792  ;;  %v795_v27 = vpop.permute.xlu0 %794 }
 0x66c   : > { %v796_v32 = vsel %vm337_vm9, %v793_v26, %v795_v27  ;;  %v797_v33 = vsel %vm337_vm9, %v795_v27, %v793_v26 }
 0x66d   : > { %v798_v44 = vsub.f32 %v797_v33, %v774_v59  ;;  %v799_v45 = vsub.f32 %v796_v32, %v775_v3 }
 0x66f   : > { %v800_v50 = vadd.f32 %v798_v44, %v790_v38  ;;  %v801_v55 = vadd.f32 %v799_v45, %v791_v39 }
 0x671   : > { %v802_v51 = vmul.f32 15.0, %v800_v50  ;;  %v803_v58 = vmul.f32 15.0, %v801_v55 }
 0x673   : > { %v804_v56 = vsub.f32 %v1804_v11, %v802_v51  ;;  %v805_v57 = vsub.f32 %v1802_v10, %v803_v58 }
 0x675   : > { %870 = vmatprep.mubr.f32.mxu1 %v805_v57 }
 0x676   : > { %871 = vmatmul.mubr.f32.vlgmr.msra.gmra.mrb[2].mxu1 %v804_v56 }
 0x749   : > { %v872_v29 = vpop.f32.mrb[2].mxu1 }
 0x74a   : > { %877 = vst [vmem:[%s228_s7] sm:$0xff] %v872_v29  ;;  %v874_v11 = vpop.f32.mrb[3].mxu1 }
 0x74b   : > { %878 = vst [vmem:[%s228_s7 + $0x8] sm:$0xff] %v874_v11 }
 0x74c   : > { %1397 = shalt.err (!%p1394_p7)
}
 0x74d   : > { %s1398_s25 = scalar_lea.hbm %s2078_s23, 256  ;;  %s1402_s14 = scalar_lea.hbm %s2124_s4, 512 }
 0x74e   : > { %p1399_p9 = scmp.ne.s32.totalorder %s2078_s23, %s1398_s25  ;;  %p1403_p0 = scmp.lt.u32.totalorder %s2078_s23, %s2124_s4 }
 0x74f   : > { %p1404_p11 = scmp.lt.u32.totalorder %s1402_s14, %s1398_s25  ;;  %p1406_p4 = scmp.lt.u32.totalorder %s1398_s25, %s2078_s23 }
 0x750   : > { %p1400_p2 = pnand %p1399_p9, %p1584_p12 }
 0x751   : > { %p1405_p1 = por %p1404_p11, %p1403_p0 }
 0x752   : > { %p1401_p5 = pneg %p1400_p2 }
 0x753   : > { %p1407_p6 = por %p1406_p4, %p1405_p1 }
 0x755   : > { %p1408_p8 = pnand %p1407_p6, %p1401_p5 }
 0x757   : > { %1411 = shalt.err (!%p1408_p8)
}
 0x758   : > { %1266 = dma.vmem_to_hbm [thread:$0]  (%p1584_p12), %s2073_s26, 256, %s2078_s23, %s880_s9  }
 0x759 PF: > { %s906_s5 = sand.u32 1, %s1442_s15   ;;  %p2139_p10 = scmp.ne.s32.totalorder %s2129_s22, 0 }
 0x75a   : > { %p2140_p13 = scmp.ge.s32.totalorder %s1454_s18, 2  ;;  %s907_s7 = scalar_lea.sflag [#allocation4], %s906_s5 }
 0x75c   : > { %p1277_p3 = pnand %p2140_p13, %p2139_p10 }
 0x75e   : > { %1437 = dma.done.wait (!%p1277_p3), %s907_s7, 256  }
 0x75f   : > { %1439 = vsyncadd (!%p1277_p3), %s907_s7, 4294967040  ;;  %p18_p7 = scmp.ge.s32.totalorder %s1549_s27, 4   ;;  %s2141_s15 = smov %s1446_s16 }
 0x760   : > { %s2142_s16 = smov %s1450_s17  ;;  %s2143_s17 = smov %s1580_s24 }
 0x761   : > { %s2144_s18 = smov %s1549_s27  ;;  %20 = sbr.rel (!%p18_p7) target bundleno = 6 (0x6), region = 85 }
 0x768   :  { %912 = vsyncpa [#allocation3], 1 }
 0x769   :  { %914 = vsyncpa [#allocation3 + $0x1], 1 }
 0x76a   :  { %915 = vsyncpa [#allocation6], 1 }
 0x76b   :  { %916 = vsyncpa [#allocation4], 1 }
 0x76c   :  { %918 = vsyncpa [#allocation4 + $0x1], 1 }

</bundles_post_ra>
